<compile_context>
chip_gen: v7x
topology: tpu7x:2x2x1
jax: 0.10.0
libtpu: 0.0.40
codegen_flags: <defaults>
</compile_context>

<pallas_src>
import functools

import jax
import jax.numpy as jnp
from jax.experimental import pallas as pl
from jax.experimental.pallas import tpu as pltpu

NUM_CLASSES = 8


def _round_up(x, m):
    return (x + m - 1) // m * m


def predict_loss_kernel(scores_ref, targets_ref, weights_ref,
                        probs_ref, classes_ref, partial_ref):
    """One batch tile: scores_ref (C, bt), targets_ref (1, bt), weights in SMEM."""
    x = scores_ref[...].astype(jnp.float32)            # (C, bt), widen in-register
    y = targets_ref[...]                                # (1, bt) int32 (-1 == padding)
    C, bt = x.shape

    # ---- predict(): softmax over classes (sublane axis), numerically stable --
    m = jnp.max(x, axis=0, keepdims=True)               # (1, bt)
    e = jnp.exp(x - m)                                   # (C, bt)
    s = jnp.sum(e, axis=0, keepdims=True)                # (1, bt)
    inv_s = pl.reciprocal(s, approx=False)               # EUP slot, exact
    probs_ref[...] = (e * inv_s).astype(probs_ref.dtype)

    # ---- predict(): argmax over classes (first max index, like torch.argmax) -
    cls = jax.lax.broadcasted_iota(jnp.int32, (C, bt), 0)
    classes_ref[...] = jnp.min(jnp.where(x == m, cls, C), axis=0, keepdims=True)

    # ---- criterion: weighted CrossEntropyLoss partial sums for this block ----
    # per-sample: w[y_i] * (logsumexp(x_i) - x_i[y_i]); padded columns (y = -1)
    # select no class, hence contribute exactly 0 to both sums.
    lse = m + jnp.log(s)                                 # (1, bt)
    w_y = jnp.zeros((1, bt), jnp.float32)
    x_y = jnp.zeros((1, bt), jnp.float32)
    for c in range(C):                                   # C == 8, unrolled
        sel = y == c
        w_y = jnp.where(sel, weights_ref[0, c], w_y)     # scalar read from SMEM
        x_y = jnp.where(sel, x[c:c + 1, :], x_y)
    num = jnp.sum(w_y * (lse - x_y))                     # scalar partial numerator
    den = jnp.sum(w_y)                                   # scalar partial denominator

    sub = jax.lax.broadcasted_iota(jnp.int32, (8, 128), 0)
    lane = jax.lax.broadcasted_iota(jnp.int32, (8, 128), 1)
    tile = (jnp.where((sub == 0) & (lane == 0), num, 0.0)
            + jnp.where((sub == 0) & (lane == 1), den, 0.0))
    partial_ref[...] = tile.reshape(1, 8, 128)


@functools.partial(jax.jit, static_argnames=("block_b",))
def network_predict_and_loss(scores, targets, class_weights, *, block_b=32768):
    """Mirrors Network.predict(...) + self.criterion(scores, Y).

    Returns (scores, probas, classes, loss).
    """
    B, C = scores.shape

    bt = min(block_b, _round_up(B, 128))        # lane-tile size (multiple of 128)
    Bp = _round_up(B, bt)                       # padded batch
    nb = Bp // bt                               # number of grid blocks

    # Layout plumbing in the wrapper: batch -> lanes (last axis), classes -> sublanes.
    scores_t = jnp.pad(scores.T, ((0, 0), (0, Bp - B)))                 # (C, Bp)
    targets_p = jnp.pad(targets.astype(jnp.int32), (0, Bp - B),
                        constant_values=-1).reshape(1, Bp)              # (1, Bp)
    weights = class_weights.astype(jnp.float32).reshape(1, C)           # SMEM scalars

    probs_t, classes_t, partials = pl.pallas_call(
        predict_loss_kernel,
        out_shape=(
            jax.ShapeDtypeStruct((C, Bp), jnp.float32),      # softmax probs (transposed)
            jax.ShapeDtypeStruct((1, Bp), jnp.int32),        # argmax classes (lane-dense)
            jax.ShapeDtypeStruct((nb, 8, 128), jnp.float32), # per-block loss partials
        ),
        grid=(nb,),
        in_specs=[
            pl.BlockSpec((C, bt), lambda i: (0, i)),
            pl.BlockSpec((1, bt), lambda i: (0, i)),
            pl.BlockSpec(memory_space=pltpu.MemorySpace.SMEM),
        ],
        out_specs=(
            pl.BlockSpec((C, bt), lambda i: (0, i)),
            pl.BlockSpec((1, bt), lambda i: (0, i)),
            pl.BlockSpec((1, 8, 128), lambda i: (i, 0, 0)),
        ),
        compiler_params=pltpu.CompilerParams(
            dimension_semantics=("parallel",)),
    )(scores_t, targets_p, weights)

    probs = probs_t[:, :B].T                     # (B, C)
    classes = classes_t[0, :B]                   # (B,)
    loss = jnp.sum(partials[:, 0, 0]) / jnp.sum(partials[:, 0, 1])
    return scores, probs, classes, loss


def _reference(scores, targets, class_weights):
    """Pure-JAX reference for validation."""
    probs = jax.nn.softmax(scores, axis=1)
    classes = jnp.argmax(probs, axis=1)
    logp = jax.nn.log_softmax(scores, axis=1)
    picked = jnp.take_along_axis(logp, targets[:, None], axis=1)[:, 0]
    w_y = class_weights[targets]
    loss = jnp.sum(w_y * (-picked)) / jnp.sum(w_y)
    return probs, classes, loss


if __name__ == "__main__":
    key = jax.random.PRNGKey(0)
    k_scores, k_targets = jax.random.split(key)

    batch = 160                                  # small, not a multiple of 128
    # Deterministic class weights, as in Network.__init__ (1 / class histogram).
    class_hist = jnp.array([2302, 2190, 686, 2101, 2475, 2083, 2520, 1953],
                           dtype=jnp.float32)
    class_weights = 1.0 / class_hist

    scores = jax.random.normal(k_scores, (batch, NUM_CLASSES), dtype=jnp.float32)
    targets = jax.random.randint(k_targets, (batch,), 0, NUM_CLASSES,
                                 dtype=jnp.int32)

    ref_probs, ref_classes, ref_loss = _reference(scores, targets, class_weights)

    # Run twice: once forcing a multi-block grid (+ padding), once with defaults.
    for blk in (128, 32768):
        out_scores, probs, classes, loss = network_predict_and_loss(
            scores, targets, class_weights, block_b=blk)
        jax.block_until_ready((out_scores, probs, classes, loss))
        assert jnp.allclose(probs, ref_probs, atol=1e-5, rtol=1e-5)
        assert jnp.array_equal(classes, ref_classes)
        assert jnp.allclose(loss, ref_loss, atol=1e-5, rtol=1e-5)

    print("KERNEL_OK")
</pallas_src>

<mosaic_0001>
module attributes {stable_mosaic.version = 11 : i64} {
  func.func @predict_loss_kernel(%arg0: i32, %arg1: memref<8x128xf32, #tpu.memory_space<vmem>>, %arg2: memref<1x128xi32, #tpu.memory_space<vmem>>, %arg3: memref<1x8xf32, #tpu.memory_space<smem>>, %arg4: memref<8x128xf32, #tpu.memory_space<vmem>>, %arg5: memref<1x128xi32, #tpu.memory_space<vmem>>, %arg6: memref<1x8x128xf32, #tpu.memory_space<vmem>>) attributes {dimension_semantics = [#tpu.dimension_semantics<parallel>], iteration_bounds = array<i64: 2>, scalar_prefetch = 0 : i64, scratch_operands = 0 : i64, tpu.core_type = #tpu.core_type<tc>, window_params = [{transform_indices = @transform_0, window_bounds = array<i64: 8, 128>}, {transform_indices = @transform_1, window_bounds = array<i64: 1, 128>}, {transform_indices = @transform_2, window_bounds = array<i64: 1, 8>}, {transform_indices = @transform_3, window_bounds = array<i64: 8, 128>}, {transform_indices = @transform_4, window_bounds = array<i64: 1, 128>}, {transform_indices = @transform_5, window_bounds = array<i64: 1, 8, 128>}]} {
    %c0 = arith.constant 0 : index
    %c0_0 = arith.constant 0 : index
    %0 = vector.load %arg1[%c0, %c0_0] : memref<8x128xf32, #tpu.memory_space<vmem>>, vector<8x128xf32>
    %c0_1 = arith.constant 0 : index
    %c0_2 = arith.constant 0 : index
    %1 = vector.load %arg2[%c0_1, %c0_2] : memref<1x128xi32, #tpu.memory_space<vmem>>, vector<1x128xi32>
    %cst = arith.constant dense<0xFF800000> : vector<128xf32>
    %2 = vector.multi_reduction <maximumf>, %0, %cst [0] : vector<8x128xf32> to vector<128xf32>
    %3 = vector.shape_cast %2 : vector<128xf32> to vector<1x128xf32>
    %4 = vector.broadcast %3 : vector<1x128xf32> to vector<8x128xf32>
    %5 = arith.subf %0, %4 : vector<8x128xf32>
    %6 = math.exp %5 : vector<8x128xf32>
    %cst_3 = arith.constant dense<0.000000e+00> : vector<128xf32>
    %7 = vector.multi_reduction <add>, %6, %cst_3 [0] : vector<8x128xf32> to vector<128xf32>
    %8 = vector.shape_cast %7 : vector<128xf32> to vector<1x128xf32>
    %9 = tpu.reciprocal %8 : vector<1x128xf32> -> vector<1x128xf32>
    %10 = vector.broadcast %9 : vector<1x128xf32> to vector<8x128xf32>
    %11 = arith.mulf %6, %10 : vector<8x128xf32>
    %c0_4 = arith.constant 0 : index
    %c0_5 = arith.constant 0 : index
    %12 = vector.load %arg4[%c0_4, %c0_5] : memref<8x128xf32, #tpu.memory_space<vmem>>, vector<8x128xf32>
    tpu.vector_store %arg4[%c0_4, %c0_5], %11 {strides = array<i32>} : memref<8x128xf32, #tpu.memory_space<vmem>>, vector<8x128xf32>,
    %13 = tpu.iota {dimensions = array<i32: 0>} : vector<8x128xi32>
    %14 = vector.broadcast %3 : vector<1x128xf32> to vector<8x128xf32>
    %15 = arith.cmpf oeq, %0, %14 : vector<8x128xf32>
    %c8_i32 = arith.constant 8 : i32
    %16 = vector.broadcast %c8_i32 : i32 to vector<8x128xi32>
    %17 = arith.select %15, %13, %16 : vector<8x128xi1>, vector<8x128xi32>
    %cst_6 = arith.constant dense<2147483647> : vector<128xi32>
    %18 = vector.multi_reduction <minsi>, %17, %cst_6 [0] : vector<8x128xi32> to vector<128xi32>
    %19 = vector.shape_cast %18 : vector<128xi32> to vector<1x128xi32>
    %c0_7 = arith.constant 0 : index
    %c0_8 = arith.constant 0 : index
    %20 = vector.load %arg5[%c0_7, %c0_8] : memref<1x128xi32, #tpu.memory_space<vmem>>, vector<1x128xi32>
    tpu.vector_store %arg5[%c0_7, %c0_8], %19 {strides = array<i32>} : memref<1x128xi32, #tpu.memory_space<vmem>>, vector<1x128xi32>,
    %21 = math.log %8 : vector<1x128xf32>
    %22 = arith.addf %3, %21 : vector<1x128xf32>
    %cst_9 = arith.constant 0.000000e+00 : f32
    %23 = vector.broadcast %cst_9 : f32 to vector<1x128xf32>
    %cst_10 = arith.constant 0.000000e+00 : f32
    %24 = vector.broadcast %cst_10 : f32 to vector<1x128xf32>
    %c0_i32 = arith.constant 0 : i32
    %25 = vector.broadcast %c0_i32 : i32 to vector<1x128xi32>
    %26 = arith.cmpi eq, %1, %25 : vector<1x128xi32>
    %c0_11 = arith.constant 0 : index
    %c0_12 = arith.constant 0 : index
    %27 = memref.load %arg3[%c0_11, %c0_12] : memref<1x8xf32, #tpu.memory_space<smem>>
    %28 = vector.broadcast %27 : f32 to vector<1x128xf32>
    %29 = arith.select %26, %28, %23 : vector<1x128xi1>, vector<1x128xf32>
    %30 = vector.extract_strided_slice %0 {offsets = [0, 0], sizes = [1, 128], strides = [1, 1]} : vector<8x128xf32> to vector<1x128xf32>
    %31 = arith.select %26, %30, %24 : vector<1x128xi1>, vector<1x128xf32>
    %c1_i32 = arith.constant 1 : i32
    %32 = vector.broadcast %c1_i32 : i32 to vector<1x128xi32>
    %33 = arith.cmpi eq, %1, %32 : vector<1x128xi32>
    %c0_13 = arith.constant 0 : index
    %c1 = arith.constant 1 : index
    %34 = memref.load %arg3[%c0_13, %c1] : memref<1x8xf32, #tpu.memory_space<smem>>
    %35 = vector.broadcast %34 : f32 to vector<1x128xf32>
    %36 = arith.select %33, %35, %29 : vector<1x128xi1>, vector<1x128xf32>
    %37 = vector.extract_strided_slice %0 {offsets = [1, 0], sizes = [1, 128], strides = [1, 1]} : vector<8x128xf32> to vector<1x128xf32>
    %38 = arith.select %33, %37, %31 : vector<1x128xi1>, vector<1x128xf32>
    %c2_i32 = arith.constant 2 : i32
    %39 = vector.broadcast %c2_i32 : i32 to vector<1x128xi32>
    %40 = arith.cmpi eq, %1, %39 : vector<1x128xi32>
    %c0_14 = arith.constant 0 : index
    %c2 = arith.constant 2 : index
    %41 = memref.load %arg3[%c0_14, %c2] : memref<1x8xf32, #tpu.memory_space<smem>>
    %42 = vector.broadcast %41 : f32 to vector<1x128xf32>
    %43 = arith.select %40, %42, %36 : vector<1x128xi1>, vector<1x128xf32>
    %44 = vector.extract_strided_slice %0 {offsets = [2, 0], sizes = [1, 128], strides = [1, 1]} : vector<8x128xf32> to vector<1x128xf32>
    %45 = arith.select %40, %44, %38 : vector<1x128xi1>, vector<1x128xf32>
    %c3_i32 = arith.constant 3 : i32
    %46 = vector.broadcast %c3_i32 : i32 to vector<1x128xi32>
    %47 = arith.cmpi eq, %1, %46 : vector<1x128xi32>
    %c0_15 = arith.constant 0 : index
    %c3 = arith.constant 3 : index
    %48 = memref.load %arg3[%c0_15, %c3] : memref<1x8xf32, #tpu.memory_space<smem>>
    %49 = vector.broadcast %48 : f32 to vector<1x128xf32>
    %50 = arith.select %47, %49, %43 : vector<1x128xi1>, vector<1x128xf32>
    %51 = vector.extract_strided_slice %0 {offsets = [3, 0], sizes = [1, 128], strides = [1, 1]} : vector<8x128xf32> to vector<1x128xf32>
    %52 = arith.select %47, %51, %45 : vector<1x128xi1>, vector<1x128xf32>
    %c4_i32 = arith.constant 4 : i32
    %53 = vector.broadcast %c4_i32 : i32 to vector<1x128xi32>
    %54 = arith.cmpi eq, %1, %53 : vector<1x128xi32>
    %c0_16 = arith.constant 0 : index
    %c4 = arith.constant 4 : index
    %55 = memref.load %arg3[%c0_16, %c4] : memref<1x8xf32, #tpu.memory_space<smem>>
    %56 = vector.broadcast %55 : f32 to vector<1x128xf32>
    %57 = arith.select %54, %56, %50 : vector<1x128xi1>, vector<1x128xf32>
    %58 = vector.extract_strided_slice %0 {offsets = [4, 0], sizes = [1, 128], strides = [1, 1]} : vector<8x128xf32> to vector<1x128xf32>
    %59 = arith.select %54, %58, %52 : vector<1x128xi1>, vector<1x128xf32>
    %c5_i32 = arith.constant 5 : i32
    %60 = vector.broadcast %c5_i32 : i32 to vector<1x128xi32>
    %61 = arith.cmpi eq, %1, %60 : vector<1x128xi32>
    %c0_17 = arith.constant 0 : index
    %c5 = arith.constant 5 : index
    %62 = memref.load %arg3[%c0_17, %c5] : memref<1x8xf32, #tpu.memory_space<smem>>
    %63 = vector.broadcast %62 : f32 to vector<1x128xf32>
    %64 = arith.select %61, %63, %57 : vector<1x128xi1>, vector<1x128xf32>
    %65 = vector.extract_strided_slice %0 {offsets = [5, 0], sizes = [1, 128], strides = [1, 1]} : vector<8x128xf32> to vector<1x128xf32>
    %66 = arith.select %61, %65, %59 : vector<1x128xi1>, vector<1x128xf32>
    %c6_i32 = arith.constant 6 : i32
    %67 = vector.broadcast %c6_i32 : i32 to vector<1x128xi32>
    %68 = arith.cmpi eq, %1, %67 : vector<1x128xi32>
    %c0_18 = arith.constant 0 : index
    %c6 = arith.constant 6 : index
    %69 = memref.load %arg3[%c0_18, %c6] : memref<1x8xf32, #tpu.memory_space<smem>>
    %70 = vector.broadcast %69 : f32 to vector<1x128xf32>
    %71 = arith.select %68, %70, %64 : vector<1x128xi1>, vector<1x128xf32>
    %72 = vector.extract_strided_slice %0 {offsets = [6, 0], sizes = [1, 128], strides = [1, 1]} : vector<8x128xf32> to vector<1x128xf32>
    %73 = arith.select %68, %72, %66 : vector<1x128xi1>, vector<1x128xf32>
    %c7_i32 = arith.constant 7 : i32
    %74 = vector.broadcast %c7_i32 : i32 to vector<1x128xi32>
    %75 = arith.cmpi eq, %1, %74 : vector<1x128xi32>
    %c0_19 = arith.constant 0 : index
    %c7 = arith.constant 7 : index
    %76 = memref.load %arg3[%c0_19, %c7] : memref<1x8xf32, #tpu.memory_space<smem>>
    %77 = vector.broadcast %76 : f32 to vector<1x128xf32>
    %78 = arith.select %75, %77, %71 : vector<1x128xi1>, vector<1x128xf32>
    %79 = vector.extract_strided_slice %0 {offsets = [7, 0], sizes = [1, 128], strides = [1, 1]} : vector<8x128xf32> to vector<1x128xf32>
    %80 = arith.select %75, %79, %73 : vector<1x128xi1>, vector<1x128xf32>
    %81 = arith.subf %22, %80 : vector<1x128xf32>
    %82 = arith.mulf %78, %81 : vector<1x128xf32>
    %83 = vector.shape_cast %82 : vector<1x128xf32> to vector<1x1x128xf32>
    %cst_20 = arith.constant dense<0.000000e+00> : vector<1xf32>
    %84 = vector.multi_reduction <add>, %83, %cst_20 [1, 2] : vector<1x1x128xf32> to vector<1xf32>
    %85 = vector.shape_cast %84 : vector<1xf32> to vector<1x1x1xf32>
    %86 = vector.extract %85[0, 0, 0] : f32 from vector<1x1x1xf32>
    %87 = vector.shape_cast %78 : vector<1x128xf32> to vector<1x1x128xf32>
    %cst_21 = arith.constant dense<0.000000e+00> : vector<1xf32>
    %88 = vector.multi_reduction <add>, %87, %cst_21 [1, 2] : vector<1x1x128xf32> to vector<1xf32>
    %89 = vector.shape_cast %88 : vector<1xf32> to vector<1x1x1xf32>
    %90 = vector.extract %89[0, 0, 0] : f32 from vector<1x1x1xf32>
    %91 = tpu.iota {dimensions = array<i32: 0>} : vector<8x128xi32>
    %92 = tpu.iota {dimensions = array<i32: 1>} : vector<8x128xi32>
    %c0_i32_22 = arith.constant 0 : i32
    %93 = vector.broadcast %c0_i32_22 : i32 to vector<8x128xi32>
    %94 = arith.cmpi eq, %91, %93 : vector<8x128xi32>
    %c0_i32_23 = arith.constant 0 : i32
    %95 = vector.broadcast %c0_i32_23 : i32 to vector<8x128xi32>
    %96 = arith.cmpi eq, %92, %95 : vector<8x128xi32>
    %97 = arith.andi %94, %96 : vector<8x128xi1>
    %cst_24 = arith.constant 0.000000e+00 : f32
    %98 = vector.broadcast %86 : f32 to vector<8x128xf32>
    %99 = vector.broadcast %cst_24 : f32 to vector<8x128xf32>
    %100 = arith.select %97, %98, %99 : vector<8x128xi1>, vector<8x128xf32>
    %c0_i32_25 = arith.constant 0 : i32
    %101 = vector.broadcast %c0_i32_25 : i32 to vector<8x128xi32>
    %102 = arith.cmpi eq, %91, %101 : vector<8x128xi32>
    %c1_i32_26 = arith.constant 1 : i32
    %103 = vector.broadcast %c1_i32_26 : i32 to vector<8x128xi32>
    %104 = arith.cmpi eq, %92, %103 : vector<8x128xi32>
    %105 = arith.andi %102, %104 : vector<8x128xi1>
    %cst_27 = arith.constant 0.000000e+00 : f32
    %106 = vector.broadcast %90 : f32 to vector<8x128xf32>
    %107 = vector.broadcast %cst_27 : f32 to vector<8x128xf32>
    %108 = arith.select %105, %106, %107 : vector<8x128xi1>, vector<8x128xf32>
    %109 = arith.addf %100, %108 : vector<8x128xf32>
    %110 = vector.shape_cast %109 : vector<8x128xf32> to vector<1x8x128xf32>
    %c0_28 = arith.constant 0 : index
    %c0_29 = arith.constant 0 : index
    %c0_30 = arith.constant 0 : index
    %111 = vector.load %arg6[%c0_28, %c0_29, %c0_30] : memref<1x8x128xf32, #tpu.memory_space<vmem>>, vector<1x8x128xf32>
    tpu.vector_store %arg6[%c0_28, %c0_29, %c0_30], %110 {strides = array<i32>} : memref<1x8x128xf32, #tpu.memory_space<vmem>>, vector<1x8x128xf32>,
    return
  }
  func.func @transform_0(%arg0: i32) -> (i32, i32) {
    %c0_i32 = arith.constant 0 : i32
    %c0_i32_0 = arith.constant 0 : i32
    return %c0_i32, %arg0 : i32, i32
  }
  func.func @transform_1(%arg0: i32) -> (i32, i32) {
    %c0_i32 = arith.constant 0 : i32
    %c0_i32_0 = arith.constant 0 : i32
    return %c0_i32, %arg0 : i32, i32
  }
  func.func @transform_2(%arg0: i32) -> (i32, i32) {
    %c0_i32 = arith.constant 0 : i32
    %c0_i32_0 = arith.constant 0 : i32
    %c0_i32_1 = arith.constant 0 : i32
    return %c0_i32, %c0_i32_0 : i32, i32
  }
  func.func @transform_3(%arg0: i32) -> (i32, i32) {
    %c0_i32 = arith.constant 0 : i32
    %c0_i32_0 = arith.constant 0 : i32
    return %c0_i32, %arg0 : i32, i32
  }
  func.func @transform_4(%arg0: i32) -> (i32, i32) {
    %c0_i32 = arith.constant 0 : i32
    %c0_i32_0 = arith.constant 0 : i32
    return %c0_i32, %arg0 : i32, i32
  }
  func.func @transform_5(%arg0: i32) -> (i32, i32, i32) {
    %c0_i32 = arith.constant 0 : i32
    %c0_i32_0 = arith.constant 0 : i32
    %c0_i32_1 = arith.constant 0 : i32
    return %arg0, %c0_i32, %c0_i32_0 : i32, i32, i32
  }
}

</mosaic_0001>

<bundles_post_ra>
// kernel: network_predict_and_loss.1
= control target key start
LH: loop header
LB: loop body
LE: loop exit
PB: predicated region body
PF: predicated region fallthrough
CT: control target
= control target key end

     0   :  { %11 = vsyncpa [#allocation4], 0  ;;  %s944_s0 = inlined_call_operand.vmem [shape: f32[8,256], index: 0, kind: input, shape index: {}]   ;;  %s945_s1 = inlined_call_operand.vmem [shape: s32[1,256], index: 1, kind: input, shape index: {}]   ;;  %s946_s2 = inlined_call_operand.vmem [shape: f32[1,8], index: 2, kind: input, shape index: {}]   ;;  %s947_s3 = inlined_call_operand.vmem [shape: f32[8,256], index: 3, kind: output, shape index: {0}]   ;;  %s948_s4 = inlined_call_operand.hbm [shape: s32[1,256], index: 4, kind: output, shape index: {1}]   ;;  %s949_s5 = inlined_call_operand.vmem [shape: f32[2,8,128], index: 5, kind: output, shape index: {2}]  }
   0x1   :  { %12 = vsyncpa [#allocation3], 0 }
   0x2   :  { %14 = vsyncpa [#allocation3 + $0x1], 0  ;;  %s786_s18 = smov 0   ;;  %s788_s19 = smov 0  }
   0x3   :  { %s790_s20 = smov 0   ;;  %s792_s21 = smov 0  }
   0x4 LB: > { %s807_s22 = sadd.s32 4294967295, %s751_s21   ;;  %s589_s23 = sadd.s32 4294967294, %s751_s21   ;;  %s751_s21 = sphi %s792_s21, %s956_s21   ;;  %s747_s20 = sphi %s790_s20, %s955_s20   ;;  %s743_s19 = sphi %s788_s19, %s954_s19   ;;  %s739_s18 = sphi %s786_s18, %s953_s18  }
   0x5   : > { %s811_s24 = sadd.s32 1, %s751_s21   ;;  %s126_s25 = sadd.s32 1, %s747_s20 }
   0x6   : > { %s123_s26 = ssub.s32 %s751_s21, %s811_s24  ;;  %p136_p0 = scmp.ne.s32.totalorder %s747_s20, %s743_s19 }
   0x7   : > { %p124_p1 = scmp.eq.s32.totalorder %s123_s26, 0  ;;  %p137_p2 = scmp.eq.s32.totalorder %s807_s22, 1 }
   0x8   : > { %p142_p3 = scmp.ne.s32.totalorder %s743_s19, %s739_s18  ;;  %p143_p4 = scmp.eq.s32.totalorder %s589_s23, 1 }
   0x9   : > { %s822_s27 = scalar_select %p124_p1, %s747_s20, %s126_s25  }
   0xa   : > { %p824_p5 = por %p137_p2, %p136_p0  ;;  %p828_p6 = por %p143_p4, %p142_p3 }
   0xb   : > { %p590_p7 = scmp.ge.s32.totalorder %s751_s21, 1  ;;  %p176_p8 = scmp.lt.s32.totalorder %s751_s21, 3 }
   0xc   : > { %p626_p9 = scmp.eq.s32.totalorder %s807_s22, 0  ;;  %s189_s8 = sshll.u32 %s946_s2, 4  ;;  %s190_s8 = int_to_ptr.vmem [resolvable:$true] %s189_s8 }
   0xd   : > { %p835_p10 = pnand %p590_p7, %p176_p8  ;;  %s670_s9 = scalar_lea.vmem %s190_s8, 16 }
   0xe   : > { %p671_p13 = scmp.ne.s32.totalorder %s190_s8, %s670_s9  ;;  %p678_p3 = scmp.lt.s32.totalorder %s190_s8, %s190_s8 }
   0xf   : > { %p618_p11 = pneg %p835_p10  ;;  %p679_p4 = scmp.lt.s32.totalorder %s670_s9, %s670_s9 }
  0x11   : > { %p619_p12 = pnand %p626_p9, %p618_p11  ;;  %p680_p7 = por %p679_p4, %p678_p3 }
  0x13   : > { %p672_p0 = pneg %p619_p12 }
  0x15   : > { %p673_p1 = pnand %p672_p0, %p671_p13 }
  0x17   : > { %p674_p2 = pneg %p673_p1 }
  0x19   : > { %p681_p8 = pnand %p680_p7, %p674_p2 }
  0x1b   : > { %684 = shalt.err (!%p681_p8)
}
  0x1c   : > { %s753_s10 = smov [#allocation2]   ;;  %215 = sbr.rel (%p835_p10) target bundleno = 317 (0x13d), region = 32 }
  0x1d   : > { %621 = dma.vmem_to_smem (!%p619_p12), %s190_s8, 16, %s753_s10, [#allocation4]  }
  0x23   : > { %730 = dma.done.wait (%p626_p9), [#allocation4], 16  }
  0x24   : > { %732 = vsyncadd (%p626_p9), [#allocation4], 4294967280 }
  0x25   : > { %221 = sfence }
  0x26   : > { %p253_p11 = scmp.lt.s32.totalorder %s807_s22, 1  ;;  %v288_v6 = vlaneseq  ;;  %v754_v7 = vmov 1966171168   ;;  %s306_s25 = sld [smem:[#allocation2]]  ;;  %vm404_vm8 = vcmask 1040384  }
  0x27   : > { %v316_v8 = vunpack.c.l.s4 %v754_v7  ;;  %s598_s26 = sld [smem:[#allocation2 + $0x1]]  ;;  %s599_s30 = sld [smem:[#allocation2 + $0x2]] }
  0x28   : > { %s254_s11 = scalar_select %p253_p11, %s807_s22, 1  ;;  %v869_v11 = vshrl.u32 %v288_v6, 7 }
  0x29   : > { %v317_v12 = vunpack.c.0.s8 %v316_v8  ;;  %s600_s6 = sld [smem:[#allocation2 + $0x3]]  ;;  %s601_s7 = sld [smem:[#allocation2 + $0x4]] }
  0x2a   : > { %s854_s12 = sshll.u32 %s254_s11, 3  ;;  %s259_s23 = scalar_lea.vmem %s945_s1, %s254_s11 }
  0x2b   : > { %s256_s15 = scalar_lea.vmem %s944_s0, %s854_s12  ;;  %v320_v14 = vsub.s32 %v317_v12, %v869_v11  ;;  %v876_v16 = vld [vmem:[%s259_s23] sm:$0x1]  ;;  %s602_s8 = sld [smem:[#allocation2 + $0x5]] }
  0x2c   : > { %v860_v0 = vld [vmem:[%s256_s15] sm:$0xff]  ;;  %vm305_vm0 = vcmp.eq.s32.totalorder %v876_v16, 0  ;;  %v307_v22 = vstv %s306_s25  ;;  %vm310_vm1 = vcmp.eq.s32.totalorder %v876_v16, 1  ;;  %vm339_vm2 = vcmp.eq.s32.totalorder %v876_v16, 2  ;;  %s603_s9 = sld [smem:[#allocation2 + $0x6]]  ;;  %s604_s10 = sld [smem:[#allocation2 + $0x7]] }
  0x2d   : > { %v270_v1 = vrot.slane %v860_v0, 4  ;;  %v321_v15 = vrot.slane %v860_v0, %v320_v14  ;;  %v357_v24 = vcombine.high %v860_v0, %v860_v0  ;;  %v309_v25 = vsel %vm305_vm0, %v860_v0, 0.0  ;;  %s263_s14 = scalar_lea.vmem %s947_s3, %s854_s12  ;;  %s245_s15 = sand.u32 1, %s743_s19  }
  0x2e   : > { %v308_v27 = vsel %vm305_vm0, %v307_v22, 0.0  ;;  %v312_v28 = vstv %s598_s26  ;;  %v341_v35 = vstv %s599_s30  ;;  %vm346_vm3 = vcmp.eq.s32.totalorder %v876_v16, 3  ;;  %s605_s16 = sshll.u32 %s807_s22, 4  ;;  %s246_s17 = scalar_lea.vmem [#allocation5], %s245_s15 }
  0x2f   : > { %v271_v2 = vmax.f32 %v860_v0, %v270_v1  ;;  %v322_v17 = vcombine.high %v321_v15, %v321_v15  ;;  %v329_v20 = vrot.slane %v321_v15, %v320_v14  ;;  %v364_v32 = vrot.slane %v357_v24, %v320_v14  ;;  %s462_s23 = sshll.u32 %s246_s17, 4  ;;  %s902_s30 = scalar_lea.hbm %s948_s4, %s605_s16  ;;  %s463_s23 = int_to_ptr.vmem [resolvable:$true] %s462_s23 }
  0x30   : > { %v313_v34 = vsel %vm310_vm1, %v312_v28, %v308_v27  ;;  %v348_v41 = vstv %s600_s6  ;;  %vm353_vm4 = vcmp.eq.s32.totalorder %v876_v16, 4  ;;  %v355_v45 = vstv %s601_s7  ;;  %s443_s6 = scalar_lea.sflag [#allocation3], %s245_s15  ;;  %s685_s7 = scalar_lea.vmem %s463_s23, 16 }
  0x31   : > { %v272_v3 = vrot.slane %v271_v2, 2  ;;  %v336_v23 = vrot.slane %v322_v17, %v320_v14  ;;  %v343_v29 = vcombine.high %v329_v20, %v329_v20  ;;  %v378_v39 = vcombine.high %v364_v32, %v364_v32  ;;  %p686_p9 = scmp.ne.s32.totalorder %s463_s23, %s685_s7 }
  0x32   : > { %v342_v40 = vsel %vm339_vm2, %v341_v35, %v313_v34  ;;  %v371_v42 = vrot.slane %v364_v32, %v320_v14  ;;  %vm374_vm5 = vcmp.eq.s32.totalorder %v876_v16, 5  ;;  %v376_v49 = vstv %s602_s8  ;;  %s755_s8 = smov [#allocation5]  }
  0x33   : > { %v273_v4 = vmax.f32 %v271_v2, %v272_v3  ;;  %v338_v31 = vsel %vm310_vm1, %v336_v23, %v309_v25  ;;  %v350_v36 = vcombine.high %v336_v23, %v336_v23  ;;  %v349_v44 = vsel %vm346_vm3, %v348_v41, %v342_v40  ;;  %p687_p10 = pnand %p686_p9, %p824_p5 }
  0x34   : > { %v345_v37 = vsel %vm339_vm2, %v343_v29, %v338_v31  ;;  %v385_v46 = vrot.slane %v378_v39, %v320_v14  ;;  %v356_v48 = vsel %vm353_vm4, %v355_v45, %v349_v44  ;;  %v392_v50 = vcombine.high %v371_v42, %v371_v42 }
  0x35   : > { %v274_v5 = vrot.slane %v273_v4, 1  ;;  %v352_v43 = vsel %vm346_vm3, %v350_v36, %v345_v37  ;;  %vm388_vm6 = vcmp.eq.s32.totalorder %v876_v16, 6  ;;  %v377_v52 = vsel %vm374_vm5, %v376_v49, %v356_v48  ;;  %p688_p12 = pneg %p687_p10 }
  0x36   : > { %v373_v47 = vsel %vm353_vm4, %v371_v42, %v352_v43  ;;  %v390_v53 = vstv %s603_s9  ;;  %v399_v54 = vcombine.high %v385_v46, %v385_v46  ;;  %vm395_vm7 = vcmp.eq.s32.totalorder %v876_v16, 7  ;;  %s689_s9 = sshll.u32 %s755_s8, 4  ;;  %s690_s9 = int_to_ptr.vmem [resolvable:$false] %s689_s9 }
  0x37   : > { %v864_v9 = vmax.f32 %v273_v4, %v274_v5  ;;  %v387_v51 = vsel %vm374_vm5, %v385_v46, %v373_v47  ;;  %v391_v59 = vsel %vm388_vm6, %v390_v53, %v377_v52  ;;  %v397_v60 = vstv %s604_s10  ;;  %s691_s10 = scalar_lea.vmem %s690_s9, 32  ;;  %p692_p13 = scmp.lt.s32.totalorder %s463_s23, %s690_s9 }
  0x38   : > { %v394_v55 = vsel %vm388_vm6, %v392_v50, %v387_v51  ;;  %v398_v1 = vsel %vm395_vm7, %v397_v60, %v391_v59  ;;  %p693_p0 = scmp.lt.s32.totalorder %s691_s10, %s685_s7 }
  0x39   : > { %v276_v10 = vsub.f32 %v860_v0, %v864_v9  ;;  %v401_v61 = vsel %vm395_vm7, %v399_v54, %v394_v55  ;;  %v415_v5 = vsel %vm404_vm8, %v398_v1, 0.0  ;;  %vm290_vm9 = vcmp.eq.f32.partialorder %v860_v0, %v864_v9 }
  0x3a   : > { %v291_v7 = vsel %vm290_vm9, %v869_v11, 8  ;;  %p694_p1 = por %p693_p0, %p692_p13 }
  0x3b   : > { %v277_v13 = vmul.f32 1.442695, %v276_v10  ;;  %v292_v8 = vrot.slane %v291_v7, 4 }
  0x3c   : > { %p695_p2 = pnand %p694_p1, %p688_p12 }
  0x3d   : > { %664 = vpow2.f32 %v277_v13  ;;  %vm293_vm10 = vcmp.lt.s32.totalorder %v291_v7, %v292_v8 }
  0x3e   : > { %v294_v10 = vsel %vm293_vm10, %v291_v7, %v292_v8 }
  0x3f   : > { %v295_v12 = vrot.slane %v294_v10, 2 }
  0x41   : > { %vm296_vm11 = vcmp.lt.s32.totalorder %v294_v10, %v295_v12 }
  0x42   : > { %v297_v13 = vsel %vm296_vm11, %v294_v10, %v295_v12 }
  0x43   : > { %v298_v14 = vrot.slane %v297_v13, 1 }
  0x45   : > { %vm299_vm12 = vcmp.lt.s32.totalorder %v297_v13, %v298_v14 }
  0x46   : > { %v300_v15 = vsel %vm299_vm12, %v297_v13, %v298_v14 }
  0x47   : > { %v665_v18 = vpop.eup %664  ;;  %301 = vst [vmem:[%s246_s17] sm:$0x1] %v300_v15 }
  0x48   : > { %v279_v19 = vrot.slane %v665_v18, 4 }
  0x4a   : > { %v280_v21 = vadd.f32 %v665_v18, %v279_v19 }
  0x4c   : > { %v281_v26 = vrot.slane %v280_v21, 2 }
  0x4e   : > { %v282_v30 = vadd.f32 %v281_v26, %v280_v21 }
  0x50   : > { %v283_v33 = vrot.slane %v282_v30, 1 }
  0x52   : > { %v284_v38 = vadd.f32 %v283_v33, %v282_v30 }
  0x54   : > { %666 = vlog2.f32 %v284_v38 }
  0x55   : > { %668 = vrcp.f32 %v284_v38 }
  0x5e   : > { %v667_v56 = vpop.eup %666 }
  0x5f   : > { %v669_v57 = vpop.eup %668  ;;  %v303_v58 = vmul.f32 0.6931472, %v667_v56 }
  0x60   : > { %v286_v62 = vmul.f32 %v669_v57, %v665_v18 }
  0x61   : > { %v304_v63 = vadd.f32 %v303_v58, %v864_v9 }
  0x62   : > { %287 = vst [vmem:[%s263_s14] sm:$0xff] %v286_v62 }
  0x63   : > { %v402_v2 = vsub.f32 %v304_v63, %v401_v61 }
  0x65   : > { %v403_v3 = vmul.f32 %v402_v2, %v398_v1 }
  0x67   : > { %v405_v4 = vsel %vm404_vm8, %v403_v3, 0.0 }
  0x68   : > { %406 = vadd.xlane.f32.xlu0 %v405_v4 }
  0x6c   : > { %416 = vadd.xlane.f32.xlu0 %v415_v5 }
  0x6d   : > { %698 = shalt.err (!%p695_p2)
}
  0x6e   : > { %s699_s22 = scalar_lea.hbm %s902_s30, 16  ;;  %s703_s14 = scalar_lea.hbm %s948_s4, 32 }
  0x6f   : > { %p700_p3 = scmp.ne.s32.totalorder %s902_s30, %s699_s22  ;;  %p704_p8 = scmp.lt.u32.totalorder %s902_s30, %s948_s4 }
  0x70   : > { %p705_p11 = scmp.lt.u32.totalorder %s703_s14, %s699_s22  ;;  %p707_p10 = scmp.lt.u32.totalorder %s699_s22, %s902_s30 }
  0x71   : > { %p701_p4 = pnand %p700_p3, %p824_p5 }
  0x72   : > { %p706_p9 = por %p705_p11, %p704_p8 }
  0x73   : > { %p702_p7 = pneg %p701_p4 }
  0x74   : > { %p708_p12 = por %p707_p10, %p706_p9 }
  0x76   : > { %p709_p13 = pnand %p708_p12, %p702_p7 }
  0x78   : > { %712 = shalt.err (!%p709_p13)
}
  0x79   : > { %616 = dma.vmem_to_hbm [thread:$0]  (%p824_p5), %s463_s23, 16, %s902_s30, %s443_s6   ;;  %v426_v28 = vand.u32 127, %v288_v6  ;;  %vm427_vm13 = vcmp.eq.s32.totalorder %v869_v11, 0 }
  0x7a   : > { %s267_s26 = scalar_lea.vmem %s949_s5, %s854_s12 }
  0x7b   : > { %vm428_vm14 = vcmp.eq.s32.totalorder %v426_v28, 0  ;;  %vm432_vm15 = vcmp.eq.s32.totalorder %v426_v28, 1 }
  0x7c   : > { %vm429_vm0 = vmand %vm427_vm13, %vm428_vm14 }
  0x7d   : > { %vm433_vm1 = vmand %vm427_vm13, %vm432_vm15 }
  0xf5   : > { %v407_v0 = vpop.xlane.xlu0 %406 }
  0xf6   : > { %v408_v9 = vrot.slane %v407_v0, 4 }
  0xf8   : > { %v409_v16 = vadd.f32 %v408_v9, %v407_v0 }
  0xf9   : > { %v417_v17 = vpop.xlane.xlu0 %416 }
  0xfa   : > { %v410_v18 = vrot.slane %v409_v16, 2  ;;  %v418_v19 = vrot.slane %v417_v17, 4 }
  0xfc   : > { %v419_v20 = vadd.f32 %v418_v19, %v417_v17  ;;  %v411_v21 = vadd.f32 %v410_v18, %v409_v16 }
  0xfe   : > { %v420_v22 = vrot.slane %v419_v20, 2  ;;  %v412_v23 = vrot.slane %v411_v21, 1 }
 0x100   : > { %v421_v24 = vadd.f32 %v420_v22, %v419_v20  ;;  %v413_v25 = vadd.f32 %v412_v23, %v411_v21 }
 0x102   : > { %608 = vpush %v413_v25  ;;  %v422_v26 = vrot.slane %v421_v24, 1 }
 0x104   : > { %v423_v27 = vadd.f32 %v422_v26, %v421_v24 }
 0x106   : > { %610 = vpush %v423_v27 }
 0x133   : > { %s609_s28 = spop %608 }
 0x134   : > { %v430_v29 = vstv %s609_s28 }
 0x135   : > { %v431_v31 = vsel %vm429_vm0, %v430_v29, 0.0 }
 0x137   : > { %s611_s17 = spop %610 }
 0x138   : > { %v434_v30 = vstv %s611_s17 }
 0x139   : > { %v435_v32 = vsel %vm433_vm1, %v434_v30, 0.0 }
 0x13a   : > { %v436_v33 = vadd.f32 %v435_v32, %v431_v31 }
 0x13c   : > { %437 = vst [vmem:[%s267_s26] sm:$0xff] %v436_v33 }
 0x13d PF: > { %p628_p5 = scmp.ge.s32.totalorder %s751_s21, 2  ;;  %s484_s30 = sand.u32 1, %s739_s18  }
 0x13e   : > { %s485_s6 = scalar_lea.sflag [#allocation3], %s484_s30 }
 0x13f   : > { %p623_p0 = pnand %p628_p5, %p828_p6 }
 0x141   : > { %734 = dma.done.wait (!%p623_p0), %s485_s6, 16  }
 0x142   : > { %736 = vsyncadd (!%p623_p0), %s485_s6, 4294967280  ;;  %p17_p1 = scmp.ge.s32.totalorder %s811_s24, 4   ;;  %s953_s18 = smov %s743_s19 }
 0x143   : > { %s954_s19 = smov %s747_s20  ;;  %s955_s20 = smov %s822_s27 }
 0x144   : > { %s956_s21 = smov %s811_s24  ;;  %19 = sbr.rel (!%p17_p1) target bundleno = 4 (0x4), region = 99 }
 0x14b   :  { %496 = vsyncpa [#allocation3], 1 }
 0x14c   :  { %498 = vsyncpa [#allocation3 + $0x1], 1 }
 0x14d   :  { %499 = vsyncpa [#allocation4], 1 }
 0x14e   :  { %501 = vsyncpa [#allocation4 + $0x1], 1 }

</bundles_post_ra>
